<compile_context>
chip_gen: v5e
topology: v5e:2x2
jax: 0.10.0
libtpu: 0.0.40
codegen_flags: <defaults>
</compile_context>

<pallas_src>
import jax
import jax.numpy as jnp
from jax.experimental import pallas as pl
from jax.experimental.pallas import tpu as pltpu

LN_EPS = 1e-5
LEAKY_SLOPE = 0.01  # nn.LeakyReLU default
DIMS = (32, 512, 256, 128, 64, 1)


def _ln_leaky_block(h, w_ref, p_ref):
    """Linear (weight stored (in,out)) + bias + LayerNorm + LeakyReLU.

    p_ref rows: 0 = bias, 1 = gamma, 2 = beta   (shape (3, D)).
    """
    d = w_ref.shape[1]
    h = jnp.dot(h, w_ref[...], preferred_element_type=jnp.float32)
    h = h + p_ref[0:1, :]
    inv_d = jnp.float32(1.0 / d)
    # One-pass LN: the two lane reductions are independent (XLU), one VPU pass saved.
    mean = jnp.sum(h, axis=-1, keepdims=True) * inv_d
    mean_sq = jnp.sum(h * h, axis=-1, keepdims=True) * inv_d
    var = mean_sq - mean * mean
    h = (h - mean) * jax.lax.rsqrt(var + LN_EPS)   # rsqrt -> EUP slot
    h = h * p_ref[1:2, :] + p_ref[2:3, :]
    return jnp.maximum(h, LEAKY_SLOPE * h)          # LeakyReLU: mul + vmax


def mlp_kernel(x_ref,
               w1_ref, p1_ref, w2_ref, p2_ref,
               w3_ref, p3_ref, w4_ref, p4_ref,
               w5_ref, b5_ref, out_ref):
    h = x_ref[...]
    h = _ln_leaky_block(h, w1_ref, p1_ref)   # 32  -> 512
    h = _ln_leaky_block(h, w2_ref, p2_ref)   # 512 -> 256
    h = _ln_leaky_block(h, w3_ref, p3_ref)   # 256 -> 128
    h = _ln_leaky_block(h, w4_ref, p4_ref)   # 128 -> 64
    # Dropout(0.4) = identity (inference).
    out_ref[...] = (jnp.dot(h, w5_ref[...], preferred_element_type=jnp.float32)
                    + b5_ref[...])


def init_params(key):
    """PyTorch nn.Linear-style init (U(-k, k), k = 1/sqrt(fan_in)).

    Weights stored (in, out) (transposed vs PyTorch's (out, in)).
    Per-layer bias / LN gamma / LN beta packed into one (3, D) array.
    """
    params = []
    for i in range(5):
        fan_in, fan_out = DIMS[i], DIMS[i + 1]
        key, kw, kb = jax.random.split(key, 3)
        bound = 1.0 / (fan_in ** 0.5)
        w = jax.random.uniform(kw, (fan_in, fan_out), jnp.float32, -bound, bound)
        b = jax.random.uniform(kb, (1, fan_out), jnp.float32, -bound, bound)
        params.append(w)
        if i < 4:  # LayerNorm follows the first four linears
            packed = jnp.concatenate(
                [b,
                 jnp.ones((1, fan_out), jnp.float32),    # gamma
                 jnp.zeros((1, fan_out), jnp.float32)],  # beta
                axis=0)                                   # (3, D)
            params.append(packed)
        else:
            params.append(b)  # head bias, (1, 1)
    return params  # [w1, p1, w2, p2, w3, p3, w4, p4, w5, b5]


def _round_up(n, m):
    return ((n + m - 1) // m) * m


def pretrained_latent_nn(x, params, tile_b=None):
    B = x.shape[0]
    if tile_b is None:
        # 512-row tiles amortize per-grid-step overhead and keep the MXU full;
        # tiny batches get a single 8-aligned padded tile instead.
        tile_b = 512 if B >= 512 else _round_up(max(B, 8), 8)
    bp = _round_up(B, tile_b)
    if bp != B:
        x = jnp.pad(x, ((0, bp - B), (0, 0)))
    grid = (bp // tile_b,)

    def resident(a):
        # full-shape block, constant index -> loaded once, stays in VMEM
        return pl.BlockSpec(a.shape, lambda i: (0,) * a.ndim)

    in_specs = [pl.BlockSpec((tile_b, DIMS[0]), lambda i: (i, 0))]
    in_specs += [resident(p) for p in params]

    out = pl.pallas_call(
        mlp_kernel,
        out_shape=jax.ShapeDtypeStruct((bp, 1), jnp.float32),
        grid=grid,
        in_specs=in_specs,
        out_specs=pl.BlockSpec((tile_b, 1), lambda i: (i, 0)),
        compiler_params=pltpu.CompilerParams(
            dimension_semantics=("parallel",),
            vmem_limit_bytes=32 << 20),
    )(x, *params)
    return out[:B]


def reference(x, params):
    w1, p1, w2, p2, w3, p3, w4, p4, w5, b5 = params
    h = x
    for w, p in ((w1, p1), (w2, p2), (w3, p3), (w4, p4)):
        h = h @ w + p[0:1, :]
        mean = jnp.mean(h, axis=-1, keepdims=True)
        var = jnp.mean((h - mean) ** 2, axis=-1, keepdims=True)
        h = (h - mean) / jnp.sqrt(var + LN_EPS) * p[1:2, :] + p[2:3, :]
        h = jnp.where(h >= 0, h, LEAKY_SLOPE * h)
    return h @ w5 + b5


if __name__ == "__main__":
    key = jax.random.PRNGKey(0)
    k_x, k_p = jax.random.split(key)

    B = 8
    x = jax.random.normal(k_x, (B, 32), jnp.float32)
    params = init_params(k_p)

    out = pretrained_latent_nn(x, params)
    out = jax.block_until_ready(out)

    ref = reference(x, params)
    assert out.shape == (B, 1), out.shape
    assert jnp.allclose(out, ref, atol=1e-3, rtol=1e-3), (out, ref)

    print("KERNEL_OK")
</pallas_src>

<mosaic_0001>
module attributes {stable_mosaic.version = 11 : i64} {
  func.func @mlp_kernel(%arg0: i32, %arg1: memref<8x32xf32, #tpu.memory_space<vmem>>, %arg2: memref<32x512xf32, #tpu.memory_space<vmem>>, %arg3: memref<3x512xf32, #tpu.memory_space<vmem>>, %arg4: memref<512x256xf32, #tpu.memory_space<vmem>>, %arg5: memref<3x256xf32, #tpu.memory_space<vmem>>, %arg6: memref<256x128xf32, #tpu.memory_space<vmem>>, %arg7: memref<3x128xf32, #tpu.memory_space<vmem>>, %arg8: memref<128x64xf32, #tpu.memory_space<vmem>>, %arg9: memref<3x64xf32, #tpu.memory_space<vmem>>, %arg10: memref<64x1xf32, #tpu.memory_space<vmem>>, %arg11: memref<1x1xf32, #tpu.memory_space<vmem>>, %arg12: memref<8x1xf32, #tpu.memory_space<vmem>>) attributes {dimension_semantics = [#tpu.dimension_semantics<parallel>], iteration_bounds = array<i64: 1>, scalar_prefetch = 0 : i64, scratch_operands = 0 : i64, tpu.core_type = #tpu.core_type<tc>, window_params = [{transform_indices = @transform_0, window_bounds = array<i64: 8, 32>}, {pipeline_mode = #tpu.pipeline_mode<synchronous>, transform_indices = @transform_1, window_bounds = array<i64: 32, 512>}, {pipeline_mode = #tpu.pipeline_mode<synchronous>, transform_indices = @transform_2, window_bounds = array<i64: 3, 512>}, {pipeline_mode = #tpu.pipeline_mode<synchronous>, transform_indices = @transform_3, window_bounds = array<i64: 512, 256>}, {pipeline_mode = #tpu.pipeline_mode<synchronous>, transform_indices = @transform_4, window_bounds = array<i64: 3, 256>}, {pipeline_mode = #tpu.pipeline_mode<synchronous>, transform_indices = @transform_5, window_bounds = array<i64: 256, 128>}, {pipeline_mode = #tpu.pipeline_mode<synchronous>, transform_indices = @transform_6, window_bounds = array<i64: 3, 128>}, {pipeline_mode = #tpu.pipeline_mode<synchronous>, transform_indices = @transform_7, window_bounds = array<i64: 128, 64>}, {pipeline_mode = #tpu.pipeline_mode<synchronous>, transform_indices = @transform_8, window_bounds = array<i64: 3, 64>}, {pipeline_mode = #tpu.pipeline_mode<synchronous>, transform_indices = @transform_9, window_bounds = array<i64: 64, 1>}, {pipeline_mode = #tpu.pipeline_mode<synchronous>, transform_indices = @transform_10, window_bounds = array<i64: 1, 1>}, {transform_indices = @transform_11, window_bounds = array<i64: 8, 1>}]} {
    %c0 = arith.constant 0 : index
    %c0_0 = arith.constant 0 : index
    %0 = vector.load %arg1[%c0, %c0_0] : memref<8x32xf32, #tpu.memory_space<vmem>>, vector<8x32xf32>
    %c0_1 = arith.constant 0 : index
    %c0_2 = arith.constant 0 : index
    %1 = vector.load %arg2[%c0_1, %c0_2] : memref<32x512xf32, #tpu.memory_space<vmem>>, vector<32x512xf32>
    %cst = arith.constant dense<0.000000e+00> : vector<8x512xf32>
    %2 = tpu.matmul %0, %1, %cst {dimension_numbers = #tpu.dot_dimension_numbers<[1], [0], [0], [1], [0, 0, 1, 1], [], []>} : vector<8x32xf32>, vector<32x512xf32>, vector<8x512xf32> -> vector<8x512xf32>
    %c0_3 = arith.constant 0 : index
    %c0_4 = arith.constant 0 : index
    %3 = vector.load %arg3[%c0_3, %c0_4] : memref<3x512xf32, #tpu.memory_space<vmem>>, vector<1x512xf32>
    %4 = vector.broadcast %3 : vector<1x512xf32> to vector<8x512xf32>
    %5 = arith.addf %2, %4 : vector<8x512xf32>
    %cst_5 = arith.constant dense<0.000000e+00> : vector<8xf32>
    %6 = vector.multi_reduction <add>, %5, %cst_5 [1] : vector<8x512xf32> to vector<8xf32>
    %7 = vector.shape_cast %6 : vector<8xf32> to vector<8x1xf32>
    %cst_6 = arith.constant 0.001953125 : f32
    %8 = vector.broadcast %cst_6 : f32 to vector<8x1xf32>
    %9 = arith.mulf %7, %8 : vector<8x1xf32>
    %10 = arith.mulf %5, %5 : vector<8x512xf32>
    %cst_7 = arith.constant dense<0.000000e+00> : vector<8xf32>
    %11 = vector.multi_reduction <add>, %10, %cst_7 [1] : vector<8x512xf32> to vector<8xf32>
    %12 = vector.shape_cast %11 : vector<8xf32> to vector<8x1xf32>
    %cst_8 = arith.constant 0.001953125 : f32
    %13 = vector.broadcast %cst_8 : f32 to vector<8x1xf32>
    %14 = arith.mulf %12, %13 : vector<8x1xf32>
    %15 = arith.mulf %9, %9 : vector<8x1xf32>
    %16 = arith.subf %14, %15 : vector<8x1xf32>
    %17 = vector.broadcast %9 : vector<8x1xf32> to vector<8x512xf32>
    %18 = arith.subf %5, %17 : vector<8x512xf32>
    %cst_9 = arith.constant 9.99999974E-6 : f32
    %19 = vector.broadcast %cst_9 : f32 to vector<8x1xf32>
    %20 = arith.addf %16, %19 : vector<8x1xf32>
    %21 = math.rsqrt %20 : vector<8x1xf32>
    %22 = vector.broadcast %21 : vector<8x1xf32> to vector<8x512xf32>
    %23 = arith.mulf %18, %22 : vector<8x512xf32>
    %c1 = arith.constant 1 : index
    %c0_10 = arith.constant 0 : index
    %24 = vector.load %arg3[%c1, %c0_10] : memref<3x512xf32, #tpu.memory_space<vmem>>, vector<1x512xf32>
    %25 = vector.broadcast %24 : vector<1x512xf32> to vector<8x512xf32>
    %26 = arith.mulf %23, %25 : vector<8x512xf32>
    %c2 = arith.constant 2 : index
    %c0_11 = arith.constant 0 : index
    %27 = vector.load %arg3[%c2, %c0_11] : memref<3x512xf32, #tpu.memory_space<vmem>>, vector<1x512xf32>
    %28 = vector.broadcast %27 : vector<1x512xf32> to vector<8x512xf32>
    %29 = arith.addf %26, %28 : vector<8x512xf32>
    %cst_12 = arith.constant 0.00999999977 : f32
    %30 = vector.broadcast %cst_12 : f32 to vector<8x512xf32>
    %31 = arith.mulf %30, %29 : vector<8x512xf32>
    %32 = arith.maximumf %29, %31 : vector<8x512xf32>
    %c0_13 = arith.constant 0 : index
    %c0_14 = arith.constant 0 : index
    %33 = vector.load %arg4[%c0_13, %c0_14] : memref<512x256xf32, #tpu.memory_space<vmem>>, vector<512x256xf32>
    %cst_15 = arith.constant dense<0.000000e+00> : vector<8x256xf32>
    %34 = tpu.matmul %32, %33, %cst_15 {dimension_numbers = #tpu.dot_dimension_numbers<[1], [0], [0], [1], [0, 0, 1, 1], [], []>} : vector<8x512xf32>, vector<512x256xf32>, vector<8x256xf32> -> vector<8x256xf32>
    %c0_16 = arith.constant 0 : index
    %c0_17 = arith.constant 0 : index
    %35 = vector.load %arg5[%c0_16, %c0_17] : memref<3x256xf32, #tpu.memory_space<vmem>>, vector<1x256xf32>
    %36 = vector.broadcast %35 : vector<1x256xf32> to vector<8x256xf32>
    %37 = arith.addf %34, %36 : vector<8x256xf32>
    %cst_18 = arith.constant dense<0.000000e+00> : vector<8xf32>
    %38 = vector.multi_reduction <add>, %37, %cst_18 [1] : vector<8x256xf32> to vector<8xf32>
    %39 = vector.shape_cast %38 : vector<8xf32> to vector<8x1xf32>
    %cst_19 = arith.constant 3.906250e-03 : f32
    %40 = vector.broadcast %cst_19 : f32 to vector<8x1xf32>
    %41 = arith.mulf %39, %40 : vector<8x1xf32>
    %42 = arith.mulf %37, %37 : vector<8x256xf32>
    %cst_20 = arith.constant dense<0.000000e+00> : vector<8xf32>
    %43 = vector.multi_reduction <add>, %42, %cst_20 [1] : vector<8x256xf32> to vector<8xf32>
    %44 = vector.shape_cast %43 : vector<8xf32> to vector<8x1xf32>
    %cst_21 = arith.constant 3.906250e-03 : f32
    %45 = vector.broadcast %cst_21 : f32 to vector<8x1xf32>
    %46 = arith.mulf %44, %45 : vector<8x1xf32>
    %47 = arith.mulf %41, %41 : vector<8x1xf32>
    %48 = arith.subf %46, %47 : vector<8x1xf32>
    %49 = vector.broadcast %41 : vector<8x1xf32> to vector<8x256xf32>
    %50 = arith.subf %37, %49 : vector<8x256xf32>
    %cst_22 = arith.constant 9.99999974E-6 : f32
    %51 = vector.broadcast %cst_22 : f32 to vector<8x1xf32>
    %52 = arith.addf %48, %51 : vector<8x1xf32>
    %53 = math.rsqrt %52 : vector<8x1xf32>
    %54 = vector.broadcast %53 : vector<8x1xf32> to vector<8x256xf32>
    %55 = arith.mulf %50, %54 : vector<8x256xf32>
    %c1_23 = arith.constant 1 : index
    %c0_24 = arith.constant 0 : index
    %56 = vector.load %arg5[%c1_23, %c0_24] : memref<3x256xf32, #tpu.memory_space<vmem>>, vector<1x256xf32>
    %57 = vector.broadcast %56 : vector<1x256xf32> to vector<8x256xf32>
    %58 = arith.mulf %55, %57 : vector<8x256xf32>
    %c2_25 = arith.constant 2 : index
    %c0_26 = arith.constant 0 : index
    %59 = vector.load %arg5[%c2_25, %c0_26] : memref<3x256xf32, #tpu.memory_space<vmem>>, vector<1x256xf32>
    %60 = vector.broadcast %59 : vector<1x256xf32> to vector<8x256xf32>
    %61 = arith.addf %58, %60 : vector<8x256xf32>
    %cst_27 = arith.constant 0.00999999977 : f32
    %62 = vector.broadcast %cst_27 : f32 to vector<8x256xf32>
    %63 = arith.mulf %62, %61 : vector<8x256xf32>
    %64 = arith.maximumf %61, %63 : vector<8x256xf32>
    %c0_28 = arith.constant 0 : index
    %c0_29 = arith.constant 0 : index
    %65 = vector.load %arg6[%c0_28, %c0_29] : memref<256x128xf32, #tpu.memory_space<vmem>>, vector<256x128xf32>
    %cst_30 = arith.constant dense<0.000000e+00> : vector<8x128xf32>
    %66 = tpu.matmul %64, %65, %cst_30 {dimension_numbers = #tpu.dot_dimension_numbers<[1], [0], [0], [1], [0, 0, 1, 1], [], []>} : vector<8x256xf32>, vector<256x128xf32>, vector<8x128xf32> -> vector<8x128xf32>
    %c0_31 = arith.constant 0 : index
    %c0_32 = arith.constant 0 : index
    %67 = vector.load %arg7[%c0_31, %c0_32] : memref<3x128xf32, #tpu.memory_space<vmem>>, vector<1x128xf32>
    %68 = vector.broadcast %67 : vector<1x128xf32> to vector<8x128xf32>
    %69 = arith.addf %66, %68 : vector<8x128xf32>
    %cst_33 = arith.constant dense<0.000000e+00> : vector<8xf32>
    %70 = vector.multi_reduction <add>, %69, %cst_33 [1] : vector<8x128xf32> to vector<8xf32>
    %71 = vector.shape_cast %70 : vector<8xf32> to vector<8x1xf32>
    %cst_34 = arith.constant 7.812500e-03 : f32
    %72 = vector.broadcast %cst_34 : f32 to vector<8x1xf32>
    %73 = arith.mulf %71, %72 : vector<8x1xf32>
    %74 = arith.mulf %69, %69 : vector<8x128xf32>
    %cst_35 = arith.constant dense<0.000000e+00> : vector<8xf32>
    %75 = vector.multi_reduction <add>, %74, %cst_35 [1] : vector<8x128xf32> to vector<8xf32>
    %76 = vector.shape_cast %75 : vector<8xf32> to vector<8x1xf32>
    %cst_36 = arith.constant 7.812500e-03 : f32
    %77 = vector.broadcast %cst_36 : f32 to vector<8x1xf32>
    %78 = arith.mulf %76, %77 : vector<8x1xf32>
    %79 = arith.mulf %73, %73 : vector<8x1xf32>
    %80 = arith.subf %78, %79 : vector<8x1xf32>
    %81 = vector.broadcast %73 : vector<8x1xf32> to vector<8x128xf32>
    %82 = arith.subf %69, %81 : vector<8x128xf32>
    %cst_37 = arith.constant 9.99999974E-6 : f32
    %83 = vector.broadcast %cst_37 : f32 to vector<8x1xf32>
    %84 = arith.addf %80, %83 : vector<8x1xf32>
    %85 = math.rsqrt %84 : vector<8x1xf32>
    %86 = vector.broadcast %85 : vector<8x1xf32> to vector<8x128xf32>
    %87 = arith.mulf %82, %86 : vector<8x128xf32>
    %c1_38 = arith.constant 1 : index
    %c0_39 = arith.constant 0 : index
    %88 = vector.load %arg7[%c1_38, %c0_39] : memref<3x128xf32, #tpu.memory_space<vmem>>, vector<1x128xf32>
    %89 = vector.broadcast %88 : vector<1x128xf32> to vector<8x128xf32>
    %90 = arith.mulf %87, %89 : vector<8x128xf32>
    %c2_40 = arith.constant 2 : index
    %c0_41 = arith.constant 0 : index
    %91 = vector.load %arg7[%c2_40, %c0_41] : memref<3x128xf32, #tpu.memory_space<vmem>>, vector<1x128xf32>
    %92 = vector.broadcast %91 : vector<1x128xf32> to vector<8x128xf32>
    %93 = arith.addf %90, %92 : vector<8x128xf32>
    %cst_42 = arith.constant 0.00999999977 : f32
    %94 = vector.broadcast %cst_42 : f32 to vector<8x128xf32>
    %95 = arith.mulf %94, %93 : vector<8x128xf32>
    %96 = arith.maximumf %93, %95 : vector<8x128xf32>
    %c0_43 = arith.constant 0 : index
    %c0_44 = arith.constant 0 : index
    %97 = vector.load %arg8[%c0_43, %c0_44] : memref<128x64xf32, #tpu.memory_space<vmem>>, vector<128x64xf32>
    %cst_45 = arith.constant dense<0.000000e+00> : vector<8x64xf32>
    %98 = tpu.matmul %96, %97, %cst_45 {dimension_numbers = #tpu.dot_dimension_numbers<[1], [0], [0], [1], [0, 0, 1, 1], [], []>} : vector<8x128xf32>, vector<128x64xf32>, vector<8x64xf32> -> vector<8x64xf32>
    %c0_46 = arith.constant 0 : index
    %c0_47 = arith.constant 0 : index
    %99 = vector.load %arg9[%c0_46, %c0_47] : memref<3x64xf32, #tpu.memory_space<vmem>>, vector<1x64xf32>
    %100 = vector.broadcast %99 : vector<1x64xf32> to vector<8x64xf32>
    %101 = arith.addf %98, %100 : vector<8x64xf32>
    %cst_48 = arith.constant dense<0.000000e+00> : vector<8xf32>
    %102 = vector.multi_reduction <add>, %101, %cst_48 [1] : vector<8x64xf32> to vector<8xf32>
    %103 = vector.shape_cast %102 : vector<8xf32> to vector<8x1xf32>
    %cst_49 = arith.constant 1.562500e-02 : f32
    %104 = vector.broadcast %cst_49 : f32 to vector<8x1xf32>
    %105 = arith.mulf %103, %104 : vector<8x1xf32>
    %106 = arith.mulf %101, %101 : vector<8x64xf32>
    %cst_50 = arith.constant dense<0.000000e+00> : vector<8xf32>
    %107 = vector.multi_reduction <add>, %106, %cst_50 [1] : vector<8x64xf32> to vector<8xf32>
    %108 = vector.shape_cast %107 : vector<8xf32> to vector<8x1xf32>
    %cst_51 = arith.constant 1.562500e-02 : f32
    %109 = vector.broadcast %cst_51 : f32 to vector<8x1xf32>
    %110 = arith.mulf %108, %109 : vector<8x1xf32>
    %111 = arith.mulf %105, %105 : vector<8x1xf32>
    %112 = arith.subf %110, %111 : vector<8x1xf32>
    %113 = vector.broadcast %105 : vector<8x1xf32> to vector<8x64xf32>
    %114 = arith.subf %101, %113 : vector<8x64xf32>
    %cst_52 = arith.constant 9.99999974E-6 : f32
    %115 = vector.broadcast %cst_52 : f32 to vector<8x1xf32>
    %116 = arith.addf %112, %115 : vector<8x1xf32>
    %117 = math.rsqrt %116 : vector<8x1xf32>
    %118 = vector.broadcast %117 : vector<8x1xf32> to vector<8x64xf32>
    %119 = arith.mulf %114, %118 : vector<8x64xf32>
    %c1_53 = arith.constant 1 : index
    %c0_54 = arith.constant 0 : index
    %120 = vector.load %arg9[%c1_53, %c0_54] : memref<3x64xf32, #tpu.memory_space<vmem>>, vector<1x64xf32>
    %121 = vector.broadcast %120 : vector<1x64xf32> to vector<8x64xf32>
    %122 = arith.mulf %119, %121 : vector<8x64xf32>
    %c2_55 = arith.constant 2 : index
    %c0_56 = arith.constant 0 : index
    %123 = vector.load %arg9[%c2_55, %c0_56] : memref<3x64xf32, #tpu.memory_space<vmem>>, vector<1x64xf32>
    %124 = vector.broadcast %123 : vector<1x64xf32> to vector<8x64xf32>
    %125 = arith.addf %122, %124 : vector<8x64xf32>
    %cst_57 = arith.constant 0.00999999977 : f32
    %126 = vector.broadcast %cst_57 : f32 to vector<8x64xf32>
    %127 = arith.mulf %126, %125 : vector<8x64xf32>
    %128 = arith.maximumf %125, %127 : vector<8x64xf32>
    %c0_58 = arith.constant 0 : index
    %c0_59 = arith.constant 0 : index
    %129 = vector.load %arg10[%c0_58, %c0_59] : memref<64x1xf32, #tpu.memory_space<vmem>>, vector<64x1xf32>
    %cst_60 = arith.constant dense<0.000000e+00> : vector<8x1xf32>
    %130 = tpu.matmul %128, %129, %cst_60 {dimension_numbers = #tpu.dot_dimension_numbers<[1], [0], [0], [1], [0, 0, 1, 1], [], []>} : vector<8x64xf32>, vector<64x1xf32>, vector<8x1xf32> -> vector<8x1xf32>
    %c0_61 = arith.constant 0 : index
    %c0_62 = arith.constant 0 : index
    %131 = vector.load %arg11[%c0_61, %c0_62] : memref<1x1xf32, #tpu.memory_space<vmem>>, vector<1x1xf32>
    %132 = vector.broadcast %131 : vector<1x1xf32> to vector<8x1xf32>
    %133 = arith.addf %130, %132 : vector<8x1xf32>
    %c0_63 = arith.constant 0 : index
    %c0_64 = arith.constant 0 : index
    %134 = vector.load %arg12[%c0_63, %c0_64] : memref<8x1xf32, #tpu.memory_space<vmem>>, vector<8x1xf32>
    tpu.vector_store %arg12[%c0_63, %c0_64], %133 {strides = array<i32>} : memref<8x1xf32, #tpu.memory_space<vmem>>, vector<8x1xf32>,
    return
  }
  func.func @transform_0(%arg0: i32) -> (i32, i32) {
    %c0_i32 = arith.constant 0 : i32
    %c0_i32_0 = arith.constant 0 : i32
    return %arg0, %c0_i32 : i32, i32
  }
  func.func @transform_1(%arg0: i32) -> (i32, i32) {
    %c0_i32 = arith.constant 0 : i32
    %c0_i32_0 = arith.constant 0 : i32
    %c0_i32_1 = arith.constant 0 : i32
    return %c0_i32, %c0_i32_0 : i32, i32
  }
  func.func @transform_2(%arg0: i32) -> (i32, i32) {
    %c0_i32 = arith.constant 0 : i32
    %c0_i32_0 = arith.constant 0 : i32
    %c0_i32_1 = arith.constant 0 : i32
    return %c0_i32, %c0_i32_0 : i32, i32
  }
  func.func @transform_3(%arg0: i32) -> (i32, i32) {
    %c0_i32 = arith.constant 0 : i32
    %c0_i32_0 = arith.constant 0 : i32
    %c0_i32_1 = arith.constant 0 : i32
    return %c0_i32, %c0_i32_0 : i32, i32
  }
  func.func @transform_4(%arg0: i32) -> (i32, i32) {
    %c0_i32 = arith.constant 0 : i32
    %c0_i32_0 = arith.constant 0 : i32
    %c0_i32_1 = arith.constant 0 : i32
    return %c0_i32, %c0_i32_0 : i32, i32
  }
  func.func @transform_5(%arg0: i32) -> (i32, i32) {
    %c0_i32 = arith.constant 0 : i32
    %c0_i32_0 = arith.constant 0 : i32
    %c0_i32_1 = arith.constant 0 : i32
    return %c0_i32, %c0_i32_0 : i32, i32
  }
  func.func @transform_6(%arg0: i32) -> (i32, i32) {
    %c0_i32 = arith.constant 0 : i32
    %c0_i32_0 = arith.constant 0 : i32
    %c0_i32_1 = arith.constant 0 : i32
    return %c0_i32, %c0_i32_0 : i32, i32
  }
  func.func @transform_7(%arg0: i32) -> (i32, i32) {
    %c0_i32 = arith.constant 0 : i32
    %c0_i32_0 = arith.constant 0 : i32
    %c0_i32_1 = arith.constant 0 : i32
    return %c0_i32, %c0_i32_0 : i32, i32
  }
  func.func @transform_8(%arg0: i32) -> (i32, i32) {
    %c0_i32 = arith.constant 0 : i32
    %c0_i32_0 = arith.constant 0 : i32
    %c0_i32_1 = arith.constant 0 : i32
    return %c0_i32, %c0_i32_0 : i32, i32
  }
  func.func @transform_9(%arg0: i32) -> (i32, i32) {
    %c0_i32 = arith.constant 0 : i32
    %c0_i32_0 = arith.constant 0 : i32
    %c0_i32_1 = arith.constant 0 : i32
    return %c0_i32, %c0_i32_0 : i32, i32
  }
  func.func @transform_10(%arg0: i32) -> (i32, i32) {
    %c0_i32 = arith.constant 0 : i32
    %c0_i32_0 = arith.constant 0 : i32
    %c0_i32_1 = arith.constant 0 : i32
    return %c0_i32, %c0_i32_0 : i32, i32
  }
  func.func @transform_11(%arg0: i32) -> (i32, i32) {
    %c0_i32 = arith.constant 0 : i32
    %c0_i32_0 = arith.constant 0 : i32
    return %arg0, %c0_i32 : i32, i32
  }
}

</mosaic_0001>

<bundles_post_ra>
// kernel: tpu_custom_call.1
= control target key start
LH: loop header
LB: loop body
LE: loop exit
PB: predicated region body
PF: predicated region fallthrough
CT: control target
= control target key end

     0   :  { %s1189_s0 = inlined_call_operand.vmem [shape: f32[8,32], index: 0, kind: input, shape index: {}]   ;;  %s1190_s1 = inlined_call_operand.vmem [shape: f32[32,512], index: 1, kind: input, shape index: {}]   ;;  %s1191_s2 = inlined_call_operand.vmem [shape: f32[3,512], index: 2, kind: input, shape index: {}]   ;;  %s1192_s3 = inlined_call_operand.hbm [shape: f32[512,256], index: 3, kind: input, shape index: {}]   ;;  %s1193_s4 = inlined_call_operand.vmem [shape: f32[3,256], index: 4, kind: input, shape index: {}]   ;;  %s1194_s5 = inlined_call_operand.hbm [shape: f32[256,128], index: 5, kind: input, shape index: {}]   ;;  %s1195_s6 = inlined_call_operand.vmem [shape: f32[3,128], index: 6, kind: input, shape index: {}]   ;;  %s1196_s7 = inlined_call_operand.vmem [shape: f32[128,64], index: 7, kind: input, shape index: {}]   ;;  %s1197_s8 = inlined_call_operand.vmem [shape: f32[3,64], index: 8, kind: input, shape index: {}]   ;;  %s1198_s9 = inlined_call_operand.vmem [shape: f32[64,1], index: 9, kind: input, shape index: {}]   ;;  %s1199_s10 = inlined_call_operand.<no memory space> [shape: f32[1,1], index: 10, kind: input, shape index: {}]   ;;  %s1200_s11 = inlined_call_operand.vmem [shape: f32[8,1], index: 11, kind: output, shape index: {}]  }
   0x1   :  { %v16_v0 = vstv %s1199_s10 }
   0x2   :  { %17 = vst [vmem:[#allocation2] sm:$0x1] %v16_v0 }
   0x3   :  { %18 = vsyncpa [#allocation4], 0  ;;  %s30_s21 = sshll.u32 %s1192_s3, 4  ;;  %s31_s21 = int_to_ptr.hbm [resolvable:$true] %s30_s21 }
   0x4   :  { %19 = vsyncpa [#allocation6], 0  ;;  %s901_s22 = smov [#allocation3]   ;;  %s45_s26 = sshll.u32 %s1194_s5, 4  ;;  %s46_s26 = int_to_ptr.hbm [resolvable:$true] %s45_s26 }
   0x5   :  { %s32_s23 = sshll.u32 %s901_s22, 4  ;;  %s902_s27 = smov 256   ;;  %s33_s23 = int_to_ptr.vmem [resolvable:$true] %s32_s23 }
   0x6   :  { %s903_s28 = smov 16   ;;  %s904_s10 = smov [#allocation5]  }
   0x7   :  { %38 = dma.hbm_to_vmem [thread:$0]  %s31_s21, 16384, %s33_s23, [#allocation4], %s902_s27, %s902_s27, %s903_s28  }
   0x8   :  { %s47_s29 = sshll.u32 %s904_s10, 4  ;;  %s905_s30 = smov 128   ;;  %s48_s29 = int_to_ptr.vmem [resolvable:$true] %s47_s29 }
   0x9   :  { %s906_s12 = smov 8  }
   0xa   :  { %53 = dma.hbm_to_vmem [thread:$0]  %s46_s26, 4096, %s48_s29, [#allocation6], %s905_s30, %s905_s30, %s906_s12  }
   0xb   :  { %897 = dma.done.wait [#allocation4], 16384  }
   0xc   :  { %898 = vsyncadd [#allocation4], 4294950912 }
   0xd   :  { %899 = dma.done.wait [#allocation6], 4096  }
   0xe   :  { %900 = vsyncadd [#allocation6], 4294963200  ;;  %v85_v1 = vld [vmem:[%s1190_s1 + $0x60] sm:$0xff]  ;;  %v87_v3 = vld [vmem:[%s1190_s1 + $0x70] sm:$0xff]  ;;  %vm99_vm0 = vcmask 261120   ;;  %vm743_vm10 = vcmask 523264  }
   0xf   :  { %v81_v2 = vld [vmem:[%s1190_s1 + $0x40] sm:$0xff]  ;;  %115 = vmatpush.msra.mxu3 %v85_v1  ;;  %155 = vmatpush.msra.mxu2 %v87_v3  ;;  %v83_v4 = vld [vmem:[%s1190_s1 + $0x50] sm:$0xff]  ;;  %v86_v6 = vld [vmem:[%s1190_s1 + $0x68] sm:$0xff]  ;;  %vm811_vm14 = vcmask 7168  }
  0x10   :  { %v77_v5 = vld [vmem:[%s1190_s1 + $0x20] sm:$0xff]  ;;  %v79_v7 = vld [vmem:[%s1190_s1 + $0x30] sm:$0xff]  ;;  %v82_v8 = vld [vmem:[%s1190_s1 + $0x48] sm:$0xff]  ;;  %135 = vmatpush.msra.mxu1 %v86_v6 }
  0x11   :  { %116 = vmatpush.msra.mxu3 %v81_v2  ;;  %156 = vmatpush.msra.mxu2 %v83_v4  ;;  %v73_v9 = vld [vmem:[%s1190_s1] sm:$0xff]  ;;  %v75_v10 = vld [vmem:[%s1190_s1 + $0x10] sm:$0xff]  ;;  %v88_v12 = vld [vmem:[%s1190_s1 + $0x78] sm:$0xff] }
  0x12   :  { %v72_v11 = vld [vmem:[%s1189_s0] sm:$0xff]  ;;  %136 = vmatpush.msra.mxu1 %v82_v8  ;;  %v84_v13 = vld [vmem:[%s1190_s1 + $0x58] sm:$0xff]  ;;  %v78_v14 = vld [vmem:[%s1190_s1 + $0x28] sm:$0xff] }
  0x13   :  { %117 = vmatpush.msra.mxu3 %v77_v5  ;;  %157 = vmatpush.msra.mxu2 %v79_v7  ;;  %v74_v15 = vld [vmem:[%s1190_s1 + $0x8] sm:$0xff]  ;;  %v80_v16 = vld [vmem:[%s1190_s1 + $0x38] sm:$0xff] }
  0x14   :  { %137 = vmatpush.msra.mxu1 %v78_v14  ;;  %v76_v17 = vld [vmem:[%s1190_s1 + $0x18] sm:$0xff]  ;;  %v286_v22 = vld [vmem:[#allocation3 + $0xe0] sm:$0xff] }
  0x15   :  { %118 = vmatpush.msra.mxu3 %v73_v9  ;;  %158 = vmatpush.msra.mxu2 %v75_v10  ;;  %v288_v18 = vld [vmem:[#allocation3 + $0xf0] sm:$0xff]  ;;  %v318_v23 = vld [vmem:[#allocation3 + $0x1e0] sm:$0xff] }
  0x16   :  { %819 = vmatmul.msk.f32.vlgmr.msra.gmra.mxu3 %vm99_vm0, %v72_v11  ;;  %821 = vmatmul.msk.f32.vlgmr.msra.gmra.mxu2 %vm99_vm0, %v72_v11  ;;  %v320_v19 = vld [vmem:[#allocation3 + $0x1f0] sm:$0xff]  ;;  %v350_v24 = vld [vmem:[#allocation3 + $0x2e0] sm:$0xff] }
  0x17   :  { %175 = vmatpush.msrb.mxu3 %v88_v12  ;;  %138 = vmatpush.msra.mxu1 %v74_v15  ;;  %v352_v20 = vld [vmem:[#allocation3 + $0x2f0] sm:$0xff]  ;;  %v382_v25 = vld [vmem:[#allocation3 + $0x3e0] sm:$0xff] }
  0x18   :  { %820 = vmatmul.msk.f32.vlgmr.msra.gmra.mxu1 %vm99_vm0, %v72_v11  ;;  %392 = vmatpush.msra.mxu0 %v288_v18  ;;  %v384_v21 = vld [vmem:[#allocation3 + $0x3f0] sm:$0xff]  ;;  %v282_v30 = vld [vmem:[#allocation3 + $0xc0] sm:$0xff] }
  0x19   :  { %176 = vmatpush.msrb.mxu3 %v84_v13  ;;  %412 = vmatpush.msrb.mxu1 %v320_v19  ;;  %v284_v26 = vld [vmem:[#allocation3 + $0xd0] sm:$0xff]  ;;  %v314_v31 = vld [vmem:[#allocation3 + $0x1c0] sm:$0xff] }
  0x1a   :  { %432 = vmatpush.msrb.mxu2 %v352_v20  ;;  %393 = vmatpush.msra.mxu0 %v286_v22  ;;  %v316_v27 = vld [vmem:[#allocation3 + $0x1d0] sm:$0xff]  ;;  %v89_v32 = vld [vmem:[%s1191_s2] ss:$4 sm:$0xf] }
  0x1b   :  { %177 = vmatpush.msrb.mxu3 %v80_v16  ;;  %413 = vmatpush.msrb.mxu1 %v318_v23  ;;  %v348_v28 = vld [vmem:[#allocation3 + $0x2d0] sm:$0xff]  ;;  %v346_v33 = vld [vmem:[#allocation3 + $0x2c0] sm:$0xff]  ;;  %v91_v39 = vperm.slane %v89_v32, 0  ;;  %v92_v40 = vperm.slane %v89_v32, 1  ;;  %v93_v49 = vperm.slane %v89_v32, 2  ;;  %v94_v52 = vperm.slane %v89_v32, 3 }
  0x1c   :  { %v380_v29 = vld [vmem:[#allocation3 + $0x3d0] sm:$0xff]  ;;  %433 = vmatpush.msrb.mxu2 %v350_v24  ;;  %394 = vmatpush.msra.mxu0 %v284_v26  ;;  %v378_v34 = vld [vmem:[#allocation3 + $0x3c0] sm:$0xff] }
  0x1d   :  { %178 = vmatpush.msrb.mxu3 %v76_v17  ;;  %414 = vmatpush.msrb.mxu1 %v316_v27  ;;  %v280_v35 = vld [vmem:[#allocation3 + $0xb0] sm:$0xff]  ;;  %v278_v41 = vld [vmem:[#allocation3 + $0xa0] sm:$0xff] }
  0x1e   :  { %822 = vmatmul.msk.f32.vlgmr.msrb.gmra.mxu3 %vm99_vm0, %v72_v11  ;;  %434 = vmatpush.msrb.mxu2 %v348_v28  ;;  %v312_v36 = vld [vmem:[#allocation3 + $0x1b0] sm:$0xff]  ;;  %v310_v42 = vld [vmem:[#allocation3 + $0x1a0] sm:$0xff] }
  0x1f   :  { %452 = vmatpush.msra.mxu3 %v384_v21  ;;  %395 = vmatpush.msra.mxu0 %v282_v30  ;;  %v344_v37 = vld [vmem:[#allocation3 + $0x2b0] sm:$0xff]  ;;  %v342_v44 = vld [vmem:[#allocation3 + $0x2a0] sm:$0xff] }
  0x20   :  { %415 = vmatpush.msrb.mxu1 %v314_v31  ;;  %v376_v38 = vld [vmem:[#allocation3 + $0x3b0] sm:$0xff]  ;;  %435 = vmatpush.msrb.mxu2 %v346_v33  ;;  %v374_v45 = vld [vmem:[#allocation3 + $0x3a0] sm:$0xff] }
  0x21   :  { %453 = vmatpush.msra.mxu3 %v382_v25  ;;  %396 = vmatpush.msra.mxu0 %v280_v35  ;;  %v276_v1 = vld [vmem:[#allocation3 + $0x90] sm:$0xff]  ;;  %v274_v5 = vld [vmem:[#allocation3 + $0x80] sm:$0xff] }
  0x22   :  { %416 = vmatpush.msrb.mxu1 %v312_v36  ;;  %436 = vmatpush.msrb.mxu2 %v344_v37  ;;  %v308_v2 = vld [vmem:[#allocation3 + $0x190] sm:$0xff]  ;;  %v306_v6 = vld [vmem:[#allocation3 + $0x180] sm:$0xff] }
  0x23   :  { %454 = vmatpush.msra.mxu3 %v380_v29  ;;  %397 = vmatpush.msra.mxu0 %v278_v41  ;;  %v340_v3 = vld [vmem:[#allocation3 + $0x290] sm:$0xff]  ;;  %v338_v7 = vld [vmem:[#allocation3 + $0x280] sm:$0xff]  ;;  %v289_v41 = vld [vmem:[#allocation3 + $0xf8] sm:$0xff] }
  0x24   :  { %417 = vmatpush.msrb.mxu1 %v310_v42  ;;  %437 = vmatpush.msrb.mxu2 %v342_v44  ;;  %v372_v4 = vld [vmem:[#allocation3 + $0x390] sm:$0xff]  ;;  %v370_v8 = vld [vmem:[#allocation3 + $0x380] sm:$0xff]  ;;  %v321_v42 = vld [vmem:[#allocation3 + $0x1f8] sm:$0xff] }
  0x25   :  { %455 = vmatpush.msra.mxu3 %v378_v34  ;;  %398 = vmatpush.msra.mxu0 %v276_v1  ;;  %v272_v9 = vld [vmem:[#allocation3 + $0x70] sm:$0xff]  ;;  %v270_v13 = vld [vmem:[#allocation3 + $0x60] sm:$0xff]  ;;  %v385_v44 = vld [vmem:[#allocation3 + $0x3f8] sm:$0xff] }
  0x26   :  { %418 = vmatpush.msrb.mxu1 %v308_v2  ;;  %438 = vmatpush.msrb.mxu2 %v340_v3  ;;  %v304_v10 = vld [vmem:[#allocation3 + $0x170] sm:$0xff]  ;;  %v302_v14 = vld [vmem:[#allocation3 + $0x160] sm:$0xff]  ;;  %v279_v1 = vld [vmem:[#allocation3 + $0xa8] sm:$0xff] }
  0x27   :  { %456 = vmatpush.msra.mxu3 %v376_v38  ;;  %399 = vmatpush.msra.mxu0 %v274_v5  ;;  %v336_v11 = vld [vmem:[#allocation3 + $0x270] sm:$0xff]  ;;  %v334_v15 = vld [vmem:[#allocation3 + $0x260] sm:$0xff]  ;;  %v311_v2 = vld [vmem:[#allocation3 + $0x1a8] sm:$0xff] }
  0x28   :  { %419 = vmatpush.msrb.mxu1 %v306_v6  ;;  %439 = vmatpush.msrb.mxu2 %v338_v7  ;;  %v368_v12 = vld [vmem:[#allocation3 + $0x370] sm:$0xff]  ;;  %v366_v16 = vld [vmem:[#allocation3 + $0x360] sm:$0xff]  ;;  %v343_v3 = vld [vmem:[#allocation3 + $0x2a8] sm:$0xff] }
  0x29   :  { %457 = vmatpush.msra.mxu3 %v374_v45  ;;  %400 = vmatpush.msra.mxu0 %v272_v9  ;;  %v268_v17 = vld [vmem:[#allocation3 + $0x50] sm:$0xff]  ;;  %v266_v21 = vld [vmem:[#allocation3 + $0x40] sm:$0xff]  ;;  %v287_v45 = vld [vmem:[#allocation3 + $0xe8] sm:$0xff] }
  0x2a   :  { %420 = vmatpush.msrb.mxu1 %v304_v10  ;;  %440 = vmatpush.msrb.mxu2 %v336_v11  ;;  %v300_v18 = vld [vmem:[#allocation3 + $0x150] sm:$0xff]  ;;  %v298_v22 = vld [vmem:[#allocation3 + $0x140] sm:$0xff]  ;;  %v277_v5 = vld [vmem:[#allocation3 + $0x98] sm:$0xff] }
  0x2b   :  { %458 = vmatpush.msra.mxu3 %v372_v4  ;;  %401 = vmatpush.msra.mxu0 %v270_v13  ;;  %v332_v19 = vld [vmem:[#allocation3 + $0x250] sm:$0xff]  ;;  %v330_v23 = vld [vmem:[#allocation3 + $0x240] sm:$0xff]  ;;  %v375_v4 = vld [vmem:[#allocation3 + $0x3a8] sm:$0xff] }
  0x2c   :  { %421 = vmatpush.msrb.mxu1 %v302_v14  ;;  %441 = vmatpush.msrb.mxu2 %v334_v15  ;;  %v364_v20 = vld [vmem:[#allocation3 + $0x350] sm:$0xff]  ;;  %v362_v24 = vld [vmem:[#allocation3 + $0x340] sm:$0xff]  ;;  %v309_v6 = vld [vmem:[#allocation3 + $0x198] sm:$0xff] }
  0x2d   :  { %459 = vmatpush.msra.mxu3 %v370_v8  ;;  %402 = vmatpush.msra.mxu0 %v268_v17  ;;  %v264_v25 = vld [vmem:[#allocation3 + $0x30] sm:$0xff]  ;;  %v262_v29 = vld [vmem:[#allocation3 + $0x20] sm:$0xff]  ;;  %v341_v7 = vld [vmem:[#allocation3 + $0x298] sm:$0xff] }
  0x2e   :  { %422 = vmatpush.msrb.mxu1 %v300_v18  ;;  %442 = vmatpush.msrb.mxu2 %v332_v19  ;;  %v296_v26 = vld [vmem:[#allocation3 + $0x130] sm:$0xff]  ;;  %v294_v30 = vld [vmem:[#allocation3 + $0x120] sm:$0xff]  ;;  %v373_v9 = vld [vmem:[#allocation3 + $0x398] sm:$0xff] }
  0x2f   :  { %460 = vmatpush.msra.mxu3 %v368_v12  ;;  %403 = vmatpush.msra.mxu0 %v266_v21  ;;  %v328_v27 = vld [vmem:[#allocation3 + $0x230] sm:$0xff]  ;;  %v326_v31 = vld [vmem:[#allocation3 + $0x220] sm:$0xff]  ;;  %v275_v10 = vld [vmem:[#allocation3 + $0x88] sm:$0xff] }
  0x30   :  { %423 = vmatpush.msrb.mxu1 %v298_v22  ;;  %443 = vmatpush.msrb.mxu2 %v330_v23  ;;  %v360_v28 = vld [vmem:[#allocation3 + $0x330] sm:$0xff]  ;;  %v358_v32 = vld [vmem:[#allocation3 + $0x320] sm:$0xff]  ;;  %v307_v11 = vld [vmem:[#allocation3 + $0x188] sm:$0xff] }
  0x31   :  { %461 = vmatpush.msra.mxu3 %v366_v16  ;;  %404 = vmatpush.msra.mxu0 %v264_v25  ;;  %v260_v33 = vld [vmem:[#allocation3 + $0x10] sm:$0xff]  ;;  %v258_v37 = vld [vmem:[#allocation3] sm:$0xff]  ;;  %v339_v12 = vld [vmem:[#allocation3 + $0x288] sm:$0xff] }
  0x32   :  { %424 = vmatpush.msrb.mxu1 %v296_v26  ;;  %444 = vmatpush.msrb.mxu2 %v328_v27  ;;  %v292_v34 = vld [vmem:[#allocation3 + $0x110] sm:$0xff]  ;;  %v290_v38 = vld [vmem:[#allocation3 + $0x100] sm:$0xff]  ;;  %v371_v13 = vld [vmem:[#allocation3 + $0x388] sm:$0xff] }
  0x33   :  { %462 = vmatpush.msra.mxu3 %v364_v20  ;;  %405 = vmatpush.msra.mxu0 %v262_v29  ;;  %v324_v35 = vld [vmem:[#allocation3 + $0x210] sm:$0xff]  ;;  %v273_v14 = vld [vmem:[#allocation3 + $0x78] sm:$0xff]  ;;  %v271_v18 = vld [vmem:[#allocation3 + $0x68] sm:$0xff] }
  0x34   :  { %425 = vmatpush.msrb.mxu1 %v294_v30  ;;  %445 = vmatpush.msrb.mxu2 %v326_v31  ;;  %v356_v36 = vld [vmem:[#allocation3 + $0x310] sm:$0xff]  ;;  %v305_v15 = vld [vmem:[#allocation3 + $0x178] sm:$0xff]  ;;  %v303_v19 = vld [vmem:[#allocation3 + $0x168] sm:$0xff] }
  0x35   :  { %463 = vmatpush.msra.mxu3 %v362_v24  ;;  %406 = vmatpush.msra.mxu0 %v260_v33  ;;  %v337_v16 = vld [vmem:[#allocation3 + $0x278] sm:$0xff]  ;;  %v335_v21 = vld [vmem:[#allocation3 + $0x268] sm:$0xff] }
  0x36   :  { %426 = vmatpush.msrb.mxu1 %v292_v34  ;;  %446 = vmatpush.msrb.mxu2 %v324_v35  ;;  %v369_v17 = vld [vmem:[#allocation3 + $0x378] sm:$0xff]  ;;  %v367_v22 = vld [vmem:[#allocation3 + $0x368] sm:$0xff] }
  0x37   :  { %464 = vmatpush.msra.mxu3 %v360_v28  ;;  %407 = vmatpush.msra.mxu0 %v258_v37  ;;  %v269_v23 = vld [vmem:[#allocation3 + $0x58] sm:$0xff]  ;;  %v267_v28 = vld [vmem:[#allocation3 + $0x48] sm:$0xff] }
  0x38   :  { %427 = vmatpush.msrb.mxu1 %v290_v38  ;;  %v301_v24 = vld [vmem:[#allocation3 + $0x158] sm:$0xff]  ;;  %v299_v29 = vld [vmem:[#allocation3 + $0x148] sm:$0xff] }
  0x39   :  { %465 = vmatpush.msra.mxu3 %v358_v32  ;;  %472 = vmatpush.msrb.mxu0 %v289_v41  ;;  %v333_v25 = vld [vmem:[#allocation3 + $0x258] sm:$0xff]  ;;  %v331_v32 = vld [vmem:[#allocation3 + $0x248] sm:$0xff] }
  0x3a   :  { %492 = vmatpush.msra.mxu1 %v321_v42  ;;  %v365_v26 = vld [vmem:[#allocation3 + $0x358] sm:$0xff]  ;;  %v363_v33 = vld [vmem:[#allocation3 + $0x348] sm:$0xff] }
  0x3b   :  { %466 = vmatpush.msra.mxu3 %v356_v36  ;;  %473 = vmatpush.msrb.mxu0 %v287_v45  ;;  %v265_v35 = vld [vmem:[#allocation3 + $0x38] sm:$0xff]  ;;  %v295_v41 = vld [vmem:[#allocation3 + $0x128] sm:$0xff] }
  0x3c   :  { %v297_v36 = vld [vmem:[#allocation3 + $0x138] sm:$0xff]  ;;  %v327_v42 = vld [vmem:[#allocation3 + $0x228] sm:$0xff] }
  0x3d   :  { %v329_v37 = vld [vmem:[#allocation3 + $0x238] sm:$0xff] }
  0x3e   :  { %v293_v45 = vld [vmem:[#allocation3 + $0x118] sm:$0xff] }
  0x95   :  { %v140_v43 = vpop.f32.mrf.mxu1 }
  0x96   :  { %v1036_v48 = vadd.f32 %v140_v43, %v92_v40  ;;  %v354_v40 = vld [vmem:[#allocation3 + $0x300] sm:$0xff]  ;;  %v353_v43 = vld [vmem:[#allocation3 + $0x2f8] sm:$0xff] }
  0x97   :  { %467 = vmatpush.msra.mxu3 %v354_v40  ;;  %v263_v40 = vld [vmem:[#allocation3 + $0x28] sm:$0xff] }
  0x98   :  { %v190_v56 = vmul.f32 %v1036_v48, %v1036_v48 }
  0x99   :  { %v120_v46 = vpop.f32.mrf.mxu3  ;;  %v160_v50 = vpop.f32.mrf.mxu2  ;;  %532 = vmatpush.msrb.mxu3 %v385_v44  ;;  %v261_v44 = vld [vmem:[#allocation3 + $0x18] sm:$0xff] }
  0x9a   :  { %v1034_v47 = vadd.f32 %v120_v46, %v91_v39  ;;  %v1038_v51 = vadd.f32 %v160_v50, %v93_v49  ;;  %v322_v39 = vld [vmem:[#allocation3 + $0x200] sm:$0xff]  ;;  %v319_v46 = vld [vmem:[#allocation3 + $0x1e8] sm:$0xff] }
  0x9b   :  { %447 = vmatpush.msrb.mxu2 %v322_v39  ;;  %v351_v49 = vld [vmem:[#allocation3 + $0x2e8] sm:$0xff]  ;;  %493 = vmatpush.msra.mxu1 %v319_v46  ;;  %v361_v39 = vld [vmem:[#allocation3 + $0x338] sm:$0xff] }
  0x9c   :  { %v183_v53 = vadd.f32 %v1036_v48, %v1034_v47  ;;  %v189_v55 = vmul.f32 %v1034_v47, %v1034_v47  ;;  %v191_v60 = vmul.f32 %v1038_v51, %v1038_v51  ;;  %v383_v50 = vld [vmem:[#allocation3 + $0x3e8] sm:$0xff]  ;;  %v325_v46 = vld [vmem:[#allocation3 + $0x218] sm:$0xff] }
  0x9d   :  { %512 = vmatpush.msra.mxu2 %v353_v43  ;;  %533 = vmatpush.msrb.mxu3 %v383_v50  ;;  %v359_v43 = vld [vmem:[#allocation3 + $0x328] sm:$0xff] }
  0x9e   :  { %v184_v58 = vadd.f32 %v183_v53, %v1038_v51  ;;  %v193_v61 = vadd.f32 %v190_v56, %v189_v55  ;;  %v317_v53 = vld [vmem:[#allocation3 + $0x1d8] sm:$0xff]  ;;  %v283_v56 = vld [vmem:[#allocation3 + $0xc8] sm:$0xff] }
  0x9f   :  { %513 = vmatpush.msra.mxu2 %v351_v49  ;;  %v381_v55 = vld [vmem:[#allocation3 + $0x3d8] sm:$0xff]  ;;  %494 = vmatpush.msra.mxu1 %v317_v53  ;;  %v259_v50 = vld [vmem:[#allocation3 + $0x8] sm:$0xff] }
  0xa0   :  { %v194_v63 = vadd.f32 %v193_v61, %v191_v60  ;;  %534 = vmatpush.msrb.mxu3 %v381_v55  ;;  %v379_v60 = vld [vmem:[#allocation3 + $0x3c8] sm:$0xff]  ;;  %v281_v61 = vld [vmem:[#allocation3 + $0xb8] sm:$0xff] }
  0xa1   :  { %v180_v54 = vpop.f32.mrf.mxu3  ;;  %v357_v49 = vld [vmem:[#allocation3 + $0x318] sm:$0xff]  ;;  %v323_v53 = vld [vmem:[#allocation3 + $0x208] sm:$0xff] }
  0xa2   :  { %v1046_v57 = vadd.f32 %v180_v54, %v94_v52  ;;  %v285_v52 = vld [vmem:[#allocation3 + $0xd8] sm:$0xff]  ;;  %535 = vmatpush.msrb.mxu3 %v379_v60  ;;  %v823_v60 = vld [vmem:[%s1191_s2 + $0x1] ss:$4 sm:$0xf] }
  0xa3   :  { %v349_v54 = vld [vmem:[#allocation3 + $0x2d8] sm:$0xff]  ;;  %474 = vmatpush.msrb.mxu0 %v285_v52  ;;  %v291_v52 = vld [vmem:[#allocation3 + $0x108] sm:$0xff] }
  0xa4   :  { %v185_v59 = vadd.f32 %v184_v58, %v1046_v57  ;;  %v192_v62 = vmul.f32 %v1046_v57, %v1046_v57  ;;  %v315_v58 = vld [vmem:[#allocation3 + $0x1c8] sm:$0xff]  ;;  %514 = vmatpush.msra.mxu2 %v349_v54 }
  0xa5   :  { %475 = vmatpush.msrb.mxu0 %v283_v56  ;;  %495 = vmatpush.msra.mxu1 %v315_v58  ;;  %v355_v54 = vld [vmem:[#allocation3 + $0x308] sm:$0xff] }
  0xa6   :  { %186 = vadd.xlane.f32.xlu0 %v185_v59  ;;  %v195_v0 = vadd.f32 %v194_v63, %v192_v62  ;;  %v347_v59 = vld [vmem:[#allocation3 + $0x2c8] sm:$0xff]  ;;  %v313_v62 = vld [vmem:[#allocation3 + $0x1b8] sm:$0xff] }
  0xa7   :  { %v345_v63 = vld [vmem:[#allocation3 + $0x2b8] sm:$0xff]  ;;  %515 = vmatpush.msra.mxu2 %v347_v59  ;;  %476 = vmatpush.msrb.mxu0 %v281_v61 }
  0xa8   :  { %496 = vmatpush.msra.mxu1 %v313_v62  ;;  %v824_v62 = vld [vmem:[%s1191_s2 + $0x2] ss:$4 sm:$0xf] }
  0xa9   :  { %516 = vmatpush.msra.mxu2 %v345_v63  ;;  %477 = vmatpush.msrb.mxu0 %v279_v1 }
  0xaa   :  { %497 = vmatpush.msra.mxu1 %v311_v2 }
  0xab   :  { %517 = vmatpush.msra.mxu2 %v343_v3  ;;  %478 = vmatpush.msrb.mxu0 %v277_v5  ;;  %v223_v3 = vperm.slane %v823_v60, 0  ;;  %v238_v5 = vperm.slane %v824_v62, 0 }
  0xac   :  { %498 = vmatpush.msra.mxu1 %v309_v6  ;;  %v224_v6 = vperm.slane %v823_v60, 1 }
  0xad   :  { %518 = vmatpush.msra.mxu2 %v341_v7  ;;  %479 = vmatpush.msrb.mxu0 %v275_v10  ;;  %v225_v7 = vperm.slane %v823_v60, 2  ;;  %v239_v10 = vperm.slane %v824_v62, 1 }
  0xae   :  { %196 = vadd.xlane.f32.xlu0 %v195_v0  ;;  %v377_v0 = vld [vmem:[#allocation3 + $0x3b8] sm:$0xff]  ;;  %499 = vmatpush.msra.mxu1 %v307_v11  ;;  %v241_v11 = vperm.slane %v824_v62, 3 }
  0xaf   :  { %536 = vmatpush.msrb.mxu3 %v377_v0  ;;  %519 = vmatpush.msra.mxu2 %v339_v12 }
  0xb0   :  { %480 = vmatpush.msrb.mxu0 %v273_v14  ;;  %500 = vmatpush.msra.mxu1 %v305_v15 }
  0xb1   :  { %537 = vmatpush.msrb.mxu3 %v375_v4  ;;  %520 = vmatpush.msra.mxu2 %v337_v16 }
  0xb2   :  { %481 = vmatpush.msrb.mxu0 %v271_v18  ;;  %501 = vmatpush.msra.mxu1 %v303_v19 }
  0xb3   :  { %538 = vmatpush.msrb.mxu3 %v373_v9  ;;  %521 = vmatpush.msra.mxu2 %v335_v21 }
  0xb4   :  { %482 = vmatpush.msrb.mxu0 %v269_v23  ;;  %502 = vmatpush.msra.mxu1 %v301_v24 }
  0xb5   :  { %539 = vmatpush.msrb.mxu3 %v371_v13  ;;  %522 = vmatpush.msra.mxu2 %v333_v25 }
  0xb6   :  { %483 = vmatpush.msrb.mxu0 %v267_v28  ;;  %503 = vmatpush.msra.mxu1 %v299_v29 }
  0xb7   :  { %540 = vmatpush.msrb.mxu3 %v369_v17  ;;  %523 = vmatpush.msra.mxu2 %v331_v32 }
  0xb8   :  { %484 = vmatpush.msrb.mxu0 %v265_v35  ;;  %504 = vmatpush.msra.mxu1 %v297_v36 }
  0xb9   :  { %541 = vmatpush.msrb.mxu3 %v367_v22  ;;  %524 = vmatpush.msra.mxu2 %v329_v37 }
  0xba   :  { %485 = vmatpush.msrb.mxu0 %v263_v40  ;;  %505 = vmatpush.msra.mxu1 %v295_v41 }
  0xbb   :  { %542 = vmatpush.msrb.mxu3 %v365_v26  ;;  %525 = vmatpush.msra.mxu2 %v327_v42 }
  0xbc   :  { %486 = vmatpush.msrb.mxu0 %v261_v44  ;;  %506 = vmatpush.msra.mxu1 %v293_v45 }
  0xbd   :  { %543 = vmatpush.msrb.mxu3 %v363_v33  ;;  %526 = vmatpush.msra.mxu2 %v325_v46 }
  0xbe   :  { %487 = vmatpush.msrb.mxu0 %v259_v50  ;;  %507 = vmatpush.msra.mxu1 %v291_v52 }
  0xbf   :  { %544 = vmatpush.msrb.mxu3 %v361_v39  ;;  %527 = vmatpush.msra.mxu2 %v323_v53 }
  0xc1   :  { %545 = vmatpush.msrb.mxu3 %v359_v43 }
  0xc3   :  { %546 = vmatpush.msrb.mxu3 %v357_v49 }
  0xc5   :  { %547 = vmatpush.msrb.mxu3 %v355_v54 }
 0x119   :  { %v187_v8 = vpop.xlane.xlu0 %186 }
 0x11a   :  { %v1054_v20 = vmul.f32 0.001953125, %v187_v8  ;;  %v226_v8 = vperm.slane %v823_v60, 3  ;;  %v614_v60 = vld [vmem:[#allocation5 + $0x68] sm:$0xff] }
 0x11c   :  { %v199_v30 = vmul.f32 %v1054_v20, %v1054_v20  ;;  %v204_v63 = vsub.f32 %v1046_v57, %v1054_v20  ;;  %v201_v0 = vsub.f32 %v1034_v47, %v1054_v20  ;;  %v202_v1 = vsub.f32 %v1036_v48, %v1054_v20 }
 0x11d   :  { %v203_v4 = vsub.f32 %v1038_v51, %v1054_v20  ;;  %v240_v57 = vperm.slane %v824_v62, 2  ;;  %v613_v62 = vld [vmem:[#allocation5 + $0x60] sm:$0xff] }
 0x121   :  { %v197_v27 = vpop.xlane.xlu0 %196 }
 0x122   :  { %v198_v31 = vmul.f32 0.001953125, %v197_v27 }
 0x124   :  { %v200_v34 = vsub.f32 %v198_v31, %v199_v30  ;;  %v386_v30 = vld [vmem:[%s1193_s4] ss:$4 sm:$0x3] }
 0x125   :  { %v388_v32 = vperm.slane %v386_v30, 0  ;;  %v389_v33 = vperm.slane %v386_v30, 1 }
 0x126   :  { %v205_v38 = vadd.f32 1e-05, %v200_v34 }
 0x128   :  { %841 = vrsqrt.f32 %v205_v38  ;;  %vm212_vm2 = vweird.f32 %v205_v38 }
 0x12e   :  { %v842_v55 = vpop.eup %841 }
 0x12f   :  { %v207_v56 = vmul.f32 %v842_v55, %v205_v38  ;;  %vm213_vm1 = vweird.f32 %v842_v55 }
 0x130   :  { %vm214_vm3 = vmor %vm212_vm2, %vm213_vm1 }
 0x131   :  { %v208_v58 = vmul.f32 %v842_v55, %v207_v56  ;;  %v632_v56 = vld [vmem:[#allocation5 + $0xf8] sm:$0xff] }
 0x133   :  { %v209_v59 = vmul.f32 0.5, %v208_v58  ;;  %v615_v58 = vld [vmem:[#allocation5 + $0x70] sm:$0xff] }
 0x135   :  { %v210_v61 = vsub.f32 1.5, %v209_v59  ;;  %v631_v59 = vld [vmem:[#allocation5 + $0xf0] sm:$0xff] }
 0x137   :  { %v211_v2 = vmul.f32 %v842_v55, %v210_v61  ;;  %v630_v61 = vld [vmem:[#allocation5 + $0xe8] sm:$0xff] }
 0x139   :  { %v215_v9 = vsel %vm214_vm3, %v842_v55, %v211_v2  ;;  %v616_v55 = vld [vmem:[#allocation5 + $0x78] sm:$0xff]  ;;  %v611_v2 = vld [vmem:[#allocation5 + $0x50] sm:$0xff] }
 0x13a   :  { %v216_v12 = vmul.f32 %v215_v9, %v201_v0  ;;  %v217_v47 = vmul.f32 %v215_v9, %v202_v1  ;;  %v218_v13 = vmul.f32 %v215_v9, %v203_v4  ;;  %v219_v14 = vmul.f32 %v215_v9, %v204_v63  ;;  %v629_v63 = vld [vmem:[#allocation5 + $0xe0] sm:$0xff]  ;;  %v612_v0 = vld [vmem:[#allocation5 + $0x58] sm:$0xff]  ;;  %v610_v4 = vld [vmem:[#allocation5 + $0x48] sm:$0xff] }
 0x13b   :  { %v628_v1 = vld [vmem:[#allocation5 + $0xd8] sm:$0xff] }
 0x13c   :  { %v231_v48 = vmul.f32 %v223_v3, %v216_v12  ;;  %v232_v15 = vmul.f32 %v224_v6, %v217_v47  ;;  %v233_v16 = vmul.f32 %v225_v7, %v218_v13  ;;  %v234_v17 = vmul.f32 %v226_v8, %v219_v14  ;;  %v627_v3 = vld [vmem:[#allocation5 + $0xd0] sm:$0xff]  ;;  %v609_v6 = vld [vmem:[#allocation5 + $0x40] sm:$0xff]  ;;  %v608_v8 = vld [vmem:[#allocation5 + $0x38] sm:$0xff] }
 0x13d   :  { %v625_v7 = vld [vmem:[#allocation5 + $0xc0] sm:$0xff]  ;;  %v624_v9 = vld [vmem:[#allocation5 + $0xb8] sm:$0xff]  ;;  %v622_v12 = vld [vmem:[#allocation5 + $0xa8] sm:$0xff] }
 0x13e   :  { %v246_v18 = vadd.f32 %v238_v5, %v231_v48  ;;  %v247_v19 = vadd.f32 %v239_v10, %v232_v15  ;;  %v248_v51 = vadd.f32 %v240_v57, %v233_v16  ;;  %v249_v20 = vadd.f32 %v241_v11, %v234_v17  ;;  %v626_v5 = vld [vmem:[#allocation5 + $0xc8] sm:$0xff]  ;;  %v607_v10 = vld [vmem:[#allocation5 + $0x30] sm:$0xff]  ;;  %v605_v13 = vld [vmem:[#allocation5 + $0x20] sm:$0xff] }
 0x13f   :  { %v623_v57 = vld [vmem:[#allocation5 + $0xb0] sm:$0xff]  ;;  %v606_v11 = vld [vmem:[#allocation5 + $0x28] sm:$0xff]  ;;  %v621_v14 = vld [vmem:[#allocation5 + $0xa0] sm:$0xff] }
 0x140   :  { %v250_v21 = vmul.f32 0.01, %v246_v18  ;;  %v251_v22 = vmul.f32 0.01, %v247_v19  ;;  %v252_v23 = vmul.f32 0.01, %v248_v51 }
 0x141   :  { %v253_v24 = vmul.f32 0.01, %v249_v20  ;;  %v604_v48 = vld [vmem:[#allocation5 + $0x18] sm:$0xff]  ;;  %v603_v16 = vld [vmem:[#allocation5 + $0x10] sm:$0xff] }
 0x142   :  { %v254_v25 = vmax.f32 %v246_v18, %v250_v21  ;;  %v255_v26 = vmax.f32 %v247_v19, %v251_v22  ;;  %v256_v27 = vmax.f32 %v248_v51, %v252_v23  ;;  %v620_v15 = vld [vmem:[#allocation5 + $0x98] sm:$0xff]  ;;  %v619_v17 = vld [vmem:[#allocation5 + $0x90] sm:$0xff]  ;;  %v602_v19 = vld [vmem:[#allocation5 + $0x8] sm:$0xff] }
 0x143   :  { %v257_v28 = vmax.f32 %v249_v20, %v253_v24  ;;  %v618_v51 = vld [vmem:[#allocation5 + $0x88] sm:$0xff]  ;;  %v601_v20 = vld [vmem:[#allocation5] sm:$0xff] }
 0x144   :  { %408 = vmatmul.f32.vlgmr.msra.gmra.mxu0 %v254_v25  ;;  %428 = vmatmul.f32.vlgmr.msrb.gmra.mxu1 %v255_v26  ;;  %v617_v21 = vld [vmem:[#allocation5 + $0x80] sm:$0xff] }
 0x145   :  { %448 = vmatmul.f32.vlgmr.msrb.gmra.mxu2 %v256_v27  ;;  %468 = vmatmul.f32.vlgmr.msra.gmra.mxu3 %v257_v28 }
 0x146   :  { %635 = vmatpush.msra.mxu0 %v616_v55  ;;  %655 = vmatpush.msrb.mxu1 %v632_v56 }
 0x148   :  { %636 = vmatpush.msra.mxu0 %v615_v58  ;;  %656 = vmatpush.msrb.mxu1 %v631_v59 }
 0x14a   :  { %637 = vmatpush.msra.mxu0 %v614_v60  ;;  %657 = vmatpush.msrb.mxu1 %v630_v61 }
 0x14c   :  { %488 = vmatmul.f32.vlgmr.msrb.gmra.mxu0 %v254_v25  ;;  %508 = vmatmul.f32.vlgmr.msra.gmra.mxu1 %v255_v26 }
 0x14d   :  { %528 = vmatmul.f32.vlgmr.msra.gmra.mxu2 %v256_v27  ;;  %548 = vmatmul.f32.vlgmr.msrb.gmra.mxu3 %v257_v28 }
 0x14e   :  { %638 = vmatpush.msra.mxu0 %v613_v62  ;;  %658 = vmatpush.msrb.mxu1 %v629_v63  ;;  %v720_v62 = vld [vmem:[%s1196_s7 + $0x78] sm:$0xff]  ;;  %v719_v63 = vld [vmem:[%s1196_s7 + $0x70] sm:$0xff] }
 0x14f   :  { %723 = vmatpush.msrb.mxu2 %v720_v62 }
 0x150   :  { %639 = vmatpush.msra.mxu0 %v612_v0  ;;  %659 = vmatpush.msrb.mxu1 %v628_v1  ;;  %v718_v0 = vld [vmem:[%s1196_s7 + $0x68] sm:$0xff]  ;;  %v717_v1 = vld [vmem:[%s1196_s7 + $0x60] sm:$0xff] }
 0x151   :  { %724 = vmatpush.msrb.mxu2 %v719_v63 }
 0x152   :  { %640 = vmatpush.msra.mxu0 %v611_v2  ;;  %660 = vmatpush.msrb.mxu1 %v627_v3  ;;  %v716_v2 = vld [vmem:[%s1196_s7 + $0x58] sm:$0xff]  ;;  %v715_v3 = vld [vmem:[%s1196_s7 + $0x50] sm:$0xff] }
 0x153   :  { %725 = vmatpush.msrb.mxu2 %v718_v0  ;;  %v838_v0 = vld [vmem:[%s1197_s8 + $0x1] ss:$0 sm:$0xff] }
 0x154   :  { %641 = vmatpush.msra.mxu0 %v610_v4  ;;  %661 = vmatpush.msrb.mxu1 %v626_v5  ;;  %v714_v4 = vld [vmem:[%s1196_s7 + $0x48] sm:$0xff]  ;;  %v713_v5 = vld [vmem:[%s1196_s7 + $0x40] sm:$0xff] }
 0x155   :  { %726 = vmatpush.msrb.mxu2 %v717_v1 }
 0x156   :  { %642 = vmatpush.msra.mxu0 %v609_v6  ;;  %662 = vmatpush.msrb.mxu1 %v625_v7  ;;  %v712_v6 = vld [vmem:[%s1196_s7 + $0x38] sm:$0xff]  ;;  %v711_v7 = vld [vmem:[%s1196_s7 + $0x30] sm:$0xff] }
 0x157   :  { %727 = vmatpush.msrb.mxu2 %v716_v2 }
 0x158   :  { %643 = vmatpush.msra.mxu0 %v608_v8  ;;  %663 = vmatpush.msrb.mxu1 %v624_v9  ;;  %v710_v8 = vld [vmem:[%s1196_s7 + $0x28] sm:$0xff] }
 0x159   :  { %728 = vmatpush.msrb.mxu2 %v715_v3  ;;  %v839_v3 = vld [vmem:[%s1197_s8 + $0x2] ss:$0 sm:$0xff] }
 0x15a   :  { %644 = vmatpush.msra.mxu0 %v607_v10  ;;  %664 = vmatpush.msrb.mxu1 %v623_v57  ;;  %v709_v10 = vld [vmem:[%s1196_s7 + $0x20] sm:$0xff]  ;;  %v708_v57 = vld [vmem:[%s1196_s7 + $0x18] sm:$0xff] }
 0x15b   :  { %729 = vmatpush.msrb.mxu2 %v714_v4 }
 0x15c   :  { %645 = vmatpush.msra.mxu0 %v606_v11  ;;  %665 = vmatpush.msrb.mxu1 %v622_v12  ;;  %v707_v11 = vld [vmem:[%s1196_s7 + $0x10] sm:$0xff] }
 0x15d   :  { %730 = vmatpush.msrb.mxu2 %v713_v5 }
 0x15e   :  { %646 = vmatpush.msra.mxu0 %v605_v13  ;;  %666 = vmatpush.msrb.mxu1 %v621_v14  ;;  %v705_v13 = vld [vmem:[%s1196_s7] sm:$0xff] }
 0x15f   :  { %731 = vmatpush.msrb.mxu2 %v712_v6 }
 0x160   :  { %647 = vmatpush.msra.mxu0 %v604_v48  ;;  %667 = vmatpush.msrb.mxu1 %v620_v15 }
 0x161   :  { %732 = vmatpush.msrb.mxu2 %v711_v7 }
 0x162   :  { %648 = vmatpush.msra.mxu0 %v603_v16  ;;  %668 = vmatpush.msrb.mxu1 %v619_v17 }
 0x163   :  { %733 = vmatpush.msrb.mxu2 %v710_v8  ;;  %v840_v8 = vld [vmem:[#allocation2] ss:$0 sm:$0xff] }
 0x164   :  { %649 = vmatpush.msra.mxu0 %v602_v19  ;;  %669 = vmatpush.msrb.mxu1 %v618_v51 }
 0x165   :  { %734 = vmatpush.msrb.mxu2 %v709_v10 }
 0x166   :  { %650 = vmatpush.msra.mxu0 %v601_v20  ;;  %670 = vmatpush.msrb.mxu1 %v617_v21 }
 0x167   :  { %735 = vmatpush.msrb.mxu2 %v708_v57 }
 0x169   :  { %736 = vmatpush.msrb.mxu2 %v707_v11 }
 0x1c1   :  { %v409_v29 = vpop.f32.mrf.mxu0  ;;  %v429_v31 = vpop.f32.mrf.mxu1 }
 0x1c2   :  { %v410_v36 = vadd.f32 %v409_v29, %v388_v32  ;;  %v825_v32 = vld [vmem:[%s1193_s4 + $0x1] ss:$4 sm:$0x3] }
 0x1c4   :  { %v430_v39 = vadd.f32 %v429_v31, %v410_v36 }
 0x1c8   :  { %v449_v34 = vpop.f32.mrf.mxu2  ;;  %v469_v35 = vpop.f32.mrf.mxu3 }
 0x1c9   :  { %v489_v37 = vpop.f32.mrf.mxu0  ;;  %v509_v40 = vpop.f32.mrf.mxu1  ;;  %v450_v41 = vadd.f32 %v449_v34, %v430_v39  ;;  %v826_v34 = vld [vmem:[%s1193_s4 + $0x2] ss:$4 sm:$0x3] }
 0x1ca   :  { %v490_v38 = vadd.f32 %v489_v37, %v389_v33  ;;  %v582_v37 = vperm.slane %v825_v32, 0 }
 0x1cb   :  { %v1075_v46 = vadd.f32 %v469_v35, %v450_v41 }
 0x1cc   :  { %v510_v42 = vadd.f32 %v509_v40, %v490_v38  ;;  %v583_v38 = vperm.slane %v825_v32, 1  ;;  %v837_v32 = vld [vmem:[%s1197_s8] ss:$0 sm:$0xff] }
 0x1cd   :  { %v556_v53 = vmul.f32 %v1075_v46, %v1075_v46 }
 0x1d0   :  { %v529_v43 = vpop.f32.mrf.mxu2  ;;  %v549_v45 = vpop.f32.mrf.mxu3 }
 0x1d1   :  { %v530_v44 = vadd.f32 %v529_v43, %v510_v42  ;;  %v591_v42 = vperm.slane %v826_v34, 0  ;;  %v592_v43 = vperm.slane %v826_v34, 1 }
 0x1d3   :  { %v1077_v49 = vadd.f32 %v549_v45, %v530_v44 }
 0x1d5   :  { %v552_v50 = vadd.f32 %v1077_v49, %v1075_v46  ;;  %v557_v52 = vmul.f32 %v1077_v49, %v1077_v49 }
 0x1d7   :  { %553 = vadd.xlane.f32.xlu1 %v552_v50  ;;  %v558_v54 = vadd.f32 %v557_v52, %v556_v53 }
 0x1df   :  { %559 = vadd.xlane.f32.xlu1 %v558_v54 }
 0x24a   :  { %v554_v47 = vpop.xlane.xlu1 %553 }
 0x24b   :  { %v555_v18 = vmul.f32 0.00390625, %v554_v47  ;;  %v706_v47 = vld [vmem:[%s1196_s7 + $0x8] sm:$0xff] }
 0x24c   :  { %737 = vmatpush.msrb.mxu2 %v706_v47 }
 0x24d   :  { %v562_v23 = vmul.f32 %v555_v18, %v555_v18  ;;  %v564_v35 = vsub.f32 %v1075_v46, %v555_v18  ;;  %v565_v36 = vsub.f32 %v1077_v49, %v555_v18  ;;  %v834_v46 = vld [vmem:[%s1195_s6] ss:$0 sm:$0xff] }
 0x24e   :  { %738 = vmatpush.msrb.mxu2 %v705_v13 }
 0x252   :  { %v560_v22 = vpop.xlane.xlu1 %559 }
 0x253   :  { %v561_v24 = vmul.f32 0.00390625, %v560_v22 }
 0x255   :  { %v563_v25 = vsub.f32 %v561_v24, %v562_v23  ;;  %v835_v24 = vld [vmem:[%s1195_s6 + $0x1] ss:$0 sm:$0xff] }
 0x257   :  { %v566_v26 = vadd.f32 1e-05, %v563_v25 }
 0x259   :  { %843 = vrsqrt.f32 %v566_v26  ;;  %vm573_vm5 = vweird.f32 %v566_v26 }
 0x25f   :  { %v844_v27 = vpop.eup %843 }
 0x260   :  { %v568_v28 = vmul.f32 %v844_v27, %v566_v26  ;;  %vm574_vm4 = vweird.f32 %v844_v27 }
 0x261   :  { %vm575_vm6 = vmor %vm573_vm5, %vm574_vm4 }
 0x262   :  { %v569_v29 = vmul.f32 %v844_v27, %v568_v28 }
 0x264   :  { %v570_v30 = vmul.f32 0.5, %v569_v29 }
 0x266   :  { %v571_v31 = vsub.f32 1.5, %v570_v30 }
 0x268   :  { %v572_v33 = vmul.f32 %v844_v27, %v571_v31 }
 0x26a   :  { %v576_v39 = vsel %vm575_vm6, %v844_v27, %v572_v33  ;;  %v836_v27 = vld [vmem:[%s1195_s6 + $0x2] ss:$0 sm:$0xff] }
 0x26b   :  { %v577_v40 = vmul.f32 %v576_v39, %v564_v35  ;;  %v578_v41 = vmul.f32 %v576_v39, %v565_v36  ;;  %v782_v39 = vld [vmem:[%s1198_s9 + $0x30] sm:$0xff] }
 0x26d   :  { %v586_v44 = vmul.f32 %v582_v37, %v577_v40  ;;  %v587_v45 = vmul.f32 %v583_v38, %v578_v41  ;;  %v783_v38 = vld [vmem:[%s1198_s9 + $0x38] sm:$0xff]  ;;  %v781_v40 = vld [vmem:[%s1198_s9 + $0x28] sm:$0xff]  ;;  %v780_v41 = vld [vmem:[%s1198_s9 + $0x20] sm:$0xff] }
 0x26e   :  { %799 = vmatpush.msra.mxu3 %v783_v38 }
 0x26f   :  { %v595_v50 = vadd.f32 %v591_v42, %v586_v44  ;;  %v596_v52 = vadd.f32 %v592_v43, %v587_v45  ;;  %v779_v42 = vld [vmem:[%s1198_s9 + $0x18] sm:$0xff]  ;;  %v778_v43 = vld [vmem:[%s1198_s9 + $0x10] sm:$0xff]  ;;  %v777_v44 = vld [vmem:[%s1198_s9 + $0x8] sm:$0xff] }
 0x270   :  { %800 = vmatpush.msra.mxu3 %v782_v39 }
 0x271   :  { %v597_v53 = vmul.f32 0.01, %v595_v50  ;;  %v598_v54 = vmul.f32 0.01, %v596_v52 }
 0x272   :  { %801 = vmatpush.msra.mxu3 %v781_v40 }
 0x273   :  { %v599_v55 = vmax.f32 %v595_v50, %v597_v53  ;;  %v600_v56 = vmax.f32 %v596_v52, %v598_v54  ;;  %v776_v52 = vld [vmem:[%s1198_s9] sm:$0xff] }
 0x274   :  { %802 = vmatpush.msra.mxu3 %v780_v41 }
 0x275   :  { %651 = vmatmul.f32.vlgmr.msra.gmra.mxu0 %v599_v55  ;;  %671 = vmatmul.f32.vlgmr.msrb.gmra.mxu1 %v600_v56 }
 0x276   :  { %803 = vmatpush.msra.mxu3 %v779_v42 }
 0x278   :  { %804 = vmatpush.msra.mxu3 %v778_v43 }
 0x27a   :  { %805 = vmatpush.msra.mxu3 %v777_v44 }
 0x27c   :  { %806 = vmatpush.msra.mxu3 %v776_v52 }
 0x2f2   :  { %v652_v49 = vpop.f32.mrf.mxu0  ;;  %v672_v59 = vpop.f32.mrf.mxu1 }
 0x2f3   :  { %v653_v58 = vadd.f32 %v834_v46, %v652_v49 }
 0x2f5   :  { %v673_v60 = vadd.f32 %v672_v59, %v653_v58 }
 0x2f7   :  { %675 = vadd.xlane.f32.xlu2 %v673_v60  ;;  %v678_v61 = vmul.f32 %v673_v60, %v673_v60 }
 0x2ff   :  { %679 = vadd.xlane.f32.xlu2 %v678_v61 }
 0x36a   :  { %v676_v9 = vpop.xlane.xlu2 %675 }
 0x36b   :  { %v677_v12 = vmul.f32 0.0078125, %v676_v9 }
 0x36d   :  { %v682_v48 = vmul.f32 %v677_v12, %v677_v12  ;;  %v684_v23 = vsub.f32 %v673_v60, %v677_v12 }
 0x372   :  { %v680_v14 = vpop.xlane.xlu2 %679 }
 0x373   :  { %v681_v15 = vmul.f32 0.0078125, %v680_v14 }
 0x375   :  { %v683_v16 = vsub.f32 %v681_v15, %v682_v48 }
 0x377   :  { %v685_v17 = vadd.f32 1e-05, %v683_v16 }
 0x379   :  { %845 = vrsqrt.f32 %v685_v17  ;;  %vm692_vm8 = vweird.f32 %v685_v17 }
 0x37f   :  { %v846_v18 = vpop.eup %845 }
 0x380   :  { %v687_v19 = vmul.f32 %v846_v18, %v685_v17  ;;  %vm693_vm7 = vweird.f32 %v846_v18 }
 0x381   :  { %vm694_vm9 = vmor %vm692_vm8, %vm693_vm7 }
 0x382   :  { %v688_v51 = vmul.f32 %v846_v18, %v687_v19 }
 0x384   :  { %v689_v20 = vmul.f32 0.5, %v688_v51 }
 0x386   :  { %v690_v21 = vsub.f32 1.5, %v689_v20 }
 0x388   :  { %v691_v22 = vmul.f32 %v846_v18, %v690_v21 }
 0x38a   :  { %v695_v25 = vsel %vm694_vm9, %v846_v18, %v691_v22 }
 0x38b   :  { %v696_v26 = vmul.f32 %v695_v25, %v684_v23 }
 0x38d   :  { %v699_v28 = vmul.f32 %v835_v24, %v696_v26 }
 0x38f   :  { %v702_v29 = vadd.f32 %v836_v27, %v699_v28 }
 0x391   :  { %v703_v30 = vmul.f32 0.01, %v702_v29 }
 0x393   :  { %v704_v31 = vmax.f32 %v702_v29, %v703_v30 }
 0x395   :  { %739 = vmatmul.f32.vlgmr.msrb.gmra.mxu2 %v704_v31 }
 0x418   :  { %v740_v33 = vpop.f32.mrf.mxu2 }
 0x419   :  { %v741_v34 = vadd.f32 %v837_v32, %v740_v33 }
 0x41b   :  { %v744_v35 = vsel %vm743_vm10, %v741_v34, 0.0  ;;  %v748_v36 = vmul.f32 %v741_v34, %v741_v34 }
 0x41c   :  { %745 = vadd.xlane.f32.xlu0 %v744_v35 }
 0x41d   :  { %v749_v37 = vsel %vm743_vm10, %v748_v36, 0.0 }
 0x41e   :  { %750 = vadd.xlane.f32.xlu1 %v749_v37 }
 0x48f   :  { %v746_v45 = vpop.xlane.xlu0 %745 }
 0x490   :  { %v747_v50 = vmul.f32 0.015625, %v746_v45 }
 0x491   :  { %v751_v53 = vpop.xlane.xlu1 %750 }
 0x492   :  { %v753_v54 = vmul.f32 %v747_v50, %v747_v50  ;;  %v752_v55 = vmul.f32 0.015625, %v751_v53  ;;  %v755_v63 = vsub.f32 %v741_v34, %v747_v50 }
 0x494   :  { %v754_v56 = vsub.f32 %v752_v55, %v753_v54 }
 0x496   :  { %v756_v46 = vadd.f32 1e-05, %v754_v56 }
 0x498   :  { %847 = vrsqrt.f32 %v756_v46  ;;  %vm763_vm12 = vweird.f32 %v756_v46 }
 0x49e   :  { %v848_v49 = vpop.eup %847 }
 0x49f   :  { %v758_v58 = vmul.f32 %v848_v49, %v756_v46  ;;  %vm764_vm11 = vweird.f32 %v848_v49 }
 0x4a0   :  { %vm765_vm13 = vmor %vm763_vm12, %vm764_vm11 }
 0x4a1   :  { %v759_v59 = vmul.f32 %v848_v49, %v758_v58 }
 0x4a3   :  { %v760_v60 = vmul.f32 0.5, %v759_v59 }
 0x4a5   :  { %v761_v61 = vsub.f32 1.5, %v760_v60 }
 0x4a7   :  { %v762_v62 = vmul.f32 %v848_v49, %v761_v61 }
 0x4a9   :  { %v766_v1 = vsel %vm765_vm13, %v848_v49, %v762_v62 }
 0x4aa   :  { %v767_v2 = vmul.f32 %v766_v1, %v755_v63 }
 0x4ac   :  { %v770_v4 = vmul.f32 %v838_v0, %v767_v2 }
 0x4ae   :  { %v773_v5 = vadd.f32 %v839_v3, %v770_v4 }
 0x4b0   :  { %v774_v6 = vmul.f32 0.01, %v773_v5 }
 0x4b2   :  { %v775_v7 = vmax.f32 %v773_v5, %v774_v6 }
 0x4b4   :  { %827 = vmatmul.msk.f32.vlgmr.msra.gmra.mxu3 %vm743_vm10, %v775_v7 }
 0x537   :  { %v808_v9 = vpop.f32.mrf.mxu3 }
 0x538   :  { %v809_v10 = vadd.f32 %v840_v8, %v808_v9 }
 0x53a   :  { %812 = vst.msk [vmem:[%s1200_s11] sm:$0xff] %vm811_vm14, %v809_v10 }
 0x53b   :  { %817 = vsyncpa [#allocation4], 1 }
 0x53c   :  { %818 = vsyncpa [#allocation6], 1 }

</bundles_post_ra>
